<compile_context>
chip_gen: v5e
topology: v5e:2x2
jax: 0.10.0
libtpu: 0.0.40
codegen_flags: <defaults>
</compile_context>

<pallas_src>
import functools

import jax
import jax.numpy as jnp
from jax import lax
from jax.experimental import pallas as pl
from jax.experimental.pallas import tpu as pltpu


# ---------------------------------------------------------------------------
# helpers
# ---------------------------------------------------------------------------
def _round_up(n, m):
    return ((n + m - 1) // m) * m


def _pad2(a, rows, cols):
    return jnp.pad(a, ((0, rows - a.shape[0]), (0, cols - a.shape[1])))


# ---------------------------------------------------------------------------
# main CD kernel: one Langevin step per grid iteration along axis 1
# ---------------------------------------------------------------------------
def _cd_step_kernel(x_ref, chain_ref, w_ref, b_ref, noise_ref,
                    pred_ref, e_pos_ref, e_neg_ref,
                    v_scr, *, step_size, noise_scale):
    k = pl.program_id(1)
    last_k = pl.num_programs(1) - 1

    w = w_ref[...]                                    # (Dp, Hp), native dtype
    b = b_ref[...].astype(jnp.float32)                # (1, Hp)

    def hidden(v):                                    # (TB, Dp) -> (TB, Hp) f32
        return jnp.dot(v.astype(w.dtype), w,
                       preferred_element_type=jnp.float32) + b

    def energy(v):                                    # (TB, Dp) -> (TB, 1) f32
        h = hidden(v)
        return (0.5 * jnp.sum(v * v, axis=-1, keepdims=True)
                - jnp.sum(jax.nn.softplus(h), axis=-1, keepdims=True))

    @pl.when(k == 0)
    def _init():
        v_scr[...] = chain_ref[...].astype(jnp.float32)
        e_pos_ref[...] = energy(x_ref[...].astype(jnp.float32))

    # One Langevin step on the carried chain state.
    v = v_scr[...]
    sig = jax.nn.sigmoid(hidden(v))                   # (TB, Hp)
    # dE/dv = v - sig @ W^T; contract along H without materializing W^T.
    back = lax.dot_general(sig.astype(w.dtype), w,
                           dimension_numbers=(((1,), (1,)), ((), ())),
                           preferred_element_type=jnp.float32)   # (TB, Dp)
    grad = v - back
    eps = noise_ref[0].astype(jnp.float32)            # streamed (TB, Dp) slice
    v_new = v - step_size * grad + noise_scale * eps
    v_scr[...] = v_new

    @pl.when(k == last_k)
    def _finalize():
        e_neg_ref[...] = energy(v_new)
        pred_ref[...] = v_new.astype(pred_ref.dtype)


def _cd_pallas(x_p, chain_p, w_p, b_p, noise_p, *, n_steps, step_size,
               noise_scale, tile_b, out_dtype):
    Bp, Dp = x_p.shape
    Hp = w_p.shape[1]
    nb = Bp // tile_b

    kern = functools.partial(_cd_step_kernel, step_size=step_size,
                             noise_scale=noise_scale)

    grid_spec = pltpu.PrefetchScalarGridSpec(
        num_scalar_prefetch=0,
        grid=(nb, n_steps),
        in_specs=[
            pl.BlockSpec((tile_b, Dp), lambda i, k: (i, 0)),        # x
            pl.BlockSpec((tile_b, Dp), lambda i, k: (i, 0)),        # chain
            pl.BlockSpec((Dp, Hp), lambda i, k: (0, 0)),            # W
            pl.BlockSpec((1, Hp), lambda i, k: (0, 0)),             # b
            pl.BlockSpec((1, tile_b, Dp), lambda i, k: (k, i, 0)),  # noise (streamed)
        ],
        out_specs=(
            pl.BlockSpec((tile_b, Dp), lambda i, k: (i, 0)),        # pred
            pl.BlockSpec((tile_b, 1), lambda i, k: (i, 0)),         # e_pos
            pl.BlockSpec((tile_b, 1), lambda i, k: (i, 0)),         # e_neg
        ),
        scratch_shapes=[pltpu.VMEM((tile_b, Dp), jnp.float32)],     # chain carry
    )

    # Rough VMEM budget (double-buffered tiles + scratch + live intermediates).
    vmem_est = 4 * (2 * (3 * tile_b * Dp + Dp * Hp + Hp)
                    + 2 * (tile_b * Dp + 2 * tile_b)
                    + tile_b * Dp
                    + 4 * tile_b * Hp)
    vmem_limit = int(min(max(2 * vmem_est, 32 * 1024 * 1024), 48 * 1024 * 1024))

    flops = 2 * Bp * Dp * Hp * (2 * n_steps + 2)
    transcendentals = Bp * Hp * (n_steps + 2)
    bytes_accessed = 4 * (x_p.size + chain_p.size + w_p.size + b_p.size
                          + noise_p.size + Bp * Dp + 2 * Bp)

    return pl.pallas_call(
        kern,
        out_shape=(jax.ShapeDtypeStruct((Bp, Dp), out_dtype),
                   jax.ShapeDtypeStruct((Bp, 1), jnp.float32),
                   jax.ShapeDtypeStruct((Bp, 1), jnp.float32)),
        grid_spec=grid_spec,
        compiler_params=pltpu.CompilerParams(
            dimension_semantics=("parallel", "arbitrary"),
            vmem_limit_bytes=vmem_limit),
        cost_estimate=pl.CostEstimate(flops=flops,
                                      transcendentals=transcendentals,
                                      bytes_accessed=bytes_accessed),
    )(x_p, chain_p, w_p, b_p, noise_p)


@functools.partial(jax.jit,
                   static_argnames=("n_steps", "step_size", "noise_scale"))
def cd_loss_pallas(x, chain, W, b, noise, *, n_steps, step_size, noise_scale):
    """Returns (scalar loss, pred_x); MCMC + energies run inside one kernel."""
    B, D = x.shape
    H = W.shape[1]
    Dp = _round_up(D, 128)
    Hp = _round_up(H, 128)
    tile_b = min(_round_up(B, 8), 128)
    Bp = _round_up(B, tile_b)

    x_p = _pad2(x, Bp, Dp)
    chain_p = _pad2(chain, Bp, Dp)
    w_p = _pad2(W, Dp, Hp)
    # Pad b with -30 so softplus/sigmoid of padded hidden units are ~0.
    b_p = jnp.pad(b.reshape(1, -1), ((0, 0), (0, Hp - H)),
                  constant_values=-30.0)
    noise_p = jnp.pad(noise, ((0, 0), (0, Bp - B), (0, Dp - D)))

    pred_p, e_pos, e_neg = _cd_pallas(
        x_p, chain_p, w_p, b_p, noise_p,
        n_steps=n_steps, step_size=step_size, noise_scale=noise_scale,
        tile_b=tile_b, out_dtype=x.dtype)

    loss = jnp.mean(e_pos[:B, 0]) - jnp.mean(e_neg[:B, 0])
    return loss, pred_p[:B, :D]


# ---------------------------------------------------------------------------
# energy-only kernel for compute_loss (no MCMC, no noise DMA)
# ---------------------------------------------------------------------------
def _energy_pair_kernel(x_ref, v_ref, w_ref, b_ref, e_pos_ref, e_neg_ref):
    w = w_ref[...]
    b = b_ref[...].astype(jnp.float32)

    def energy(v):
        h = jnp.dot(v.astype(w.dtype), w, preferred_element_type=jnp.float32) + b
        return (0.5 * jnp.sum(v * v, axis=-1, keepdims=True)
                - jnp.sum(jax.nn.softplus(h), axis=-1, keepdims=True))

    e_pos_ref[...] = energy(x_ref[...].astype(jnp.float32))
    e_neg_ref[...] = energy(v_ref[...].astype(jnp.float32))


@jax.jit
def energy_pair_pallas(x, pred_x, W, b):
    B, D = x.shape
    H = W.shape[1]
    Dp = _round_up(D, 128)
    Hp = _round_up(H, 128)
    tile_b = min(_round_up(B, 8), 128)
    Bp = _round_up(B, tile_b)
    nb = Bp // tile_b

    x_p = _pad2(x, Bp, Dp)
    v_p = _pad2(pred_x, Bp, Dp)
    w_p = _pad2(W, Dp, Hp)
    b_p = jnp.pad(b.reshape(1, -1), ((0, 0), (0, Hp - H)),
                  constant_values=-30.0)

    e_pos, e_neg = pl.pallas_call(
        _energy_pair_kernel,
        out_shape=(jax.ShapeDtypeStruct((Bp, 1), jnp.float32),
                   jax.ShapeDtypeStruct((Bp, 1), jnp.float32)),
        grid=(nb,),
        in_specs=[pl.BlockSpec((tile_b, Dp), lambda i: (i, 0)),
                  pl.BlockSpec((tile_b, Dp), lambda i: (i, 0)),
                  pl.BlockSpec((Dp, Hp), lambda i: (0, 0)),
                  pl.BlockSpec((1, Hp), lambda i: (0, 0))],
        out_specs=(pl.BlockSpec((tile_b, 1), lambda i: (i, 0)),
                   pl.BlockSpec((tile_b, 1), lambda i: (i, 0))),
        compiler_params=pltpu.CompilerParams(
            dimension_semantics=("parallel",)),
    )(x_p, v_p, w_p, b_p)
    return e_pos[:B, 0], e_neg[:B, 0]


# ---------------------------------------------------------------------------
# module wrapper (JAX analogue of BaseContrastiveDivergence, concrete variant)
# ---------------------------------------------------------------------------
class ContrastiveDivergence:
    """JAX/Pallas analogue of BaseContrastiveDivergence (concrete CD-k / PCD).

    The abstract energy_function / sampler are instantiated concretely as an
    RBM-style free energy and a Langevin MCMC sampler.
    """

    def __init__(self, dim, hidden, n_steps=1, persistent=False,
                 step_size=0.1, noise_scale=0.01, dtype=jnp.float32, seed=42):
        self.n_steps = n_steps
        self.persistent = persistent
        self.step_size = float(step_size)
        self.noise_scale = float(noise_scale)
        self.dtype = dtype
        self.chain = None                         # persistent-chain buffer
        kw, kb = jax.random.split(jax.random.PRNGKey(seed))
        self.W = (0.1 * jax.random.normal(kw, (dim, hidden))).astype(dtype)
        self.b = (0.01 * jax.random.normal(kb, (hidden,))).astype(dtype)
        self._noise_key = jax.random.PRNGKey(seed + 1)

    def initialize_persistent_chain(self, shape):
        if self.chain is None or self.chain.shape != shape:
            self._noise_key, sub = jax.random.split(self._noise_key)
            self.chain = jax.random.normal(sub, shape, dtype=self.dtype)
        return self.chain

    def __call__(self, x):
        return self.forward(x)

    def forward(self, x):
        B, D = x.shape
        x = x.astype(self.dtype)
        if self.persistent:
            start = self.initialize_persistent_chain((B, D))
        else:
            start = x                              # standard CD-k: chains start at data
        if self.n_steps <= 0:
            pred_x = start
            loss = self.compute_loss(x, pred_x)
        else:
            self._noise_key, sub = jax.random.split(self._noise_key)
            noise = jax.random.normal(sub, (self.n_steps, B, D),
                                      dtype=jnp.float32)
            loss, pred_x = cd_loss_pallas(
                x, start.astype(self.dtype), self.W, self.b, noise,
                n_steps=self.n_steps, step_size=self.step_size,
                noise_scale=self.noise_scale)
        if self.persistent:
            self.chain = pred_x                    # PCD chain update (same dtype as x)
        return loss, pred_x

    def compute_loss(self, x, pred_x):
        e_pos, e_neg = energy_pair_pallas(x.astype(self.dtype),
                                          pred_x.astype(self.dtype),
                                          self.W, self.b)
        return jnp.mean(e_pos) - jnp.mean(e_neg)


# ---------------------------------------------------------------------------
# pure-JAX reference
# ---------------------------------------------------------------------------
def _reference(x, chain, W, b, noise, n_steps, step_size, noise_scale):
    def energy(v):
        h = v @ W + b
        return 0.5 * jnp.sum(v * v, -1) - jnp.sum(jax.nn.softplus(h), -1)

    def grad_e(v):
        h = v @ W + b
        return v - jax.nn.sigmoid(h) @ W.T

    v = chain
    for t in range(n_steps):
        v = v - step_size * grad_e(v) + noise_scale * noise[t]
    return jnp.mean(energy(x)) - jnp.mean(energy(v)), v


if __name__ == "__main__":
    B, D, H, K = 8, 32, 32, 3
    key = jax.random.PRNGKey(0)
    kx, kc, kn, kw, kb = jax.random.split(key, 5)

    x = jax.random.normal(kx, (B, D), dtype=jnp.float32)
    W = (0.1 * jax.random.normal(kw, (D, H))).astype(jnp.float32)
    b = (0.01 * jax.random.normal(kb, (H,))).astype(jnp.float32)
    chain0 = jax.random.normal(kc, (B, D), dtype=jnp.float32)
    noise = jax.random.normal(kn, (K, B, D), dtype=jnp.float32)
    step_size, noise_scale = 0.1, 0.01

    # Kernel vs pure-JAX reference with identical chain / noise replay.
    k_loss, k_pred = cd_loss_pallas(x, chain0, W, b, noise, n_steps=K,
                                    step_size=step_size,
                                    noise_scale=noise_scale)
    jax.block_until_ready((k_loss, k_pred))
    ref_loss, ref_pred = _reference(x, chain0, W, b, noise, K,
                                    step_size, noise_scale)
    assert jnp.allclose(k_loss, ref_loss, atol=1e-4), (k_loss, ref_loss)
    assert jnp.allclose(k_pred, ref_pred, atol=1e-4)

    # Module-style usage: persistent CD forward + compute_loss consistency.
    cd = ContrastiveDivergence(dim=D, hidden=H, n_steps=K, persistent=True,
                               step_size=step_size, noise_scale=noise_scale)
    loss, pred_x = cd(x)
    jax.block_until_ready((loss, pred_x))
    assert bool(jnp.isfinite(loss))
    loss2 = cd.compute_loss(x, pred_x)
    jax.block_until_ready(loss2)
    assert jnp.allclose(loss, loss2, atol=1e-4), (loss, loss2)

    print("KERNEL_OK")
</pallas_src>

<mosaic_0001>
module attributes {stable_mosaic.version = 11 : i64} {
  func.func @_cd_step_kernel(%arg0: i32, %arg1: i32, %arg2: memref<8x128xf32, #tpu.memory_space<vmem>>, %arg3: memref<8x128xf32, #tpu.memory_space<vmem>>, %arg4: memref<128x128xf32, #tpu.memory_space<vmem>>, %arg5: memref<1x128xf32, #tpu.memory_space<vmem>>, %arg6: memref<1x8x128xf32, #tpu.memory_space<vmem>>, %arg7: memref<8x128xf32, #tpu.memory_space<vmem>>, %arg8: memref<8x1xf32, #tpu.memory_space<vmem>>, %arg9: memref<8x1xf32, #tpu.memory_space<vmem>>, %arg10: memref<8x128xf32, #tpu.memory_space<vmem>>) attributes {dimension_semantics = [#tpu.dimension_semantics<parallel>, #tpu.dimension_semantics<arbitrary>], iteration_bounds = array<i64: 1, 3>, scalar_prefetch = 0 : i64, scratch_operands = 1 : i64, tpu.core_type = #tpu.core_type<tc>, window_params = [{transform_indices = @transform_0, window_bounds = array<i64: 8, 128>}, {transform_indices = @transform_1, window_bounds = array<i64: 8, 128>}, {pipeline_mode = #tpu.pipeline_mode<synchronous>, transform_indices = @transform_2, window_bounds = array<i64: 128, 128>}, {pipeline_mode = #tpu.pipeline_mode<synchronous>, transform_indices = @transform_3, window_bounds = array<i64: 1, 128>}, {transform_indices = @transform_4, window_bounds = array<i64: 1, 8, 128>}, {transform_indices = @transform_5, window_bounds = array<i64: 8, 128>}, {transform_indices = @transform_6, window_bounds = array<i64: 8, 1>}, {transform_indices = @transform_7, window_bounds = array<i64: 8, 1>}]} {
    %c0 = arith.constant 0 : index
    %c0_0 = arith.constant 0 : index
    %0 = vector.load %arg4[%c0, %c0_0] : memref<128x128xf32, #tpu.memory_space<vmem>>, vector<128x128xf32>
    %c0_1 = arith.constant 0 : index
    %c0_2 = arith.constant 0 : index
    %1 = vector.load %arg5[%c0_1, %c0_2] : memref<1x128xf32, #tpu.memory_space<vmem>>, vector<1x128xf32>
    %c0_i32 = arith.constant 0 : i32
    %2 = arith.cmpi eq, %arg1, %c0_i32 : i32
    %3 = arith.extui %2 : i1 to i32
    %c0_i32_3 = arith.constant 0 : i32
    %4 = arith.cmpi ne, %3, %c0_i32_3 : i32
    scf.if %4 {
      %c0_16 = arith.constant 0 : index
      %c0_17 = arith.constant 0 : index
      %28 = vector.load %arg3[%c0_16, %c0_17] : memref<8x128xf32, #tpu.memory_space<vmem>>, vector<8x128xf32>
      %c0_18 = arith.constant 0 : index
      %c0_19 = arith.constant 0 : index
      %29 = vector.load %arg10[%c0_18, %c0_19] : memref<8x128xf32, #tpu.memory_space<vmem>>, vector<8x128xf32>
      tpu.vector_store %arg10[%c0_18, %c0_19], %28 {strides = array<i32>} : memref<8x128xf32, #tpu.memory_space<vmem>>, vector<8x128xf32>,
      %c0_20 = arith.constant 0 : index
      %c0_21 = arith.constant 0 : index
      %30 = vector.load %arg2[%c0_20, %c0_21] : memref<8x128xf32, #tpu.memory_space<vmem>>, vector<8x128xf32>
      %cst_22 = arith.constant dense<0.000000e+00> : vector<8x128xf32>
      %31 = tpu.matmul %30, %0, %cst_22 {dimension_numbers = #tpu.dot_dimension_numbers<[1], [0], [0], [1], [0, 0, 1, 1], [], []>} : vector<8x128xf32>, vector<128x128xf32>, vector<8x128xf32> -> vector<8x128xf32>
      %32 = vector.broadcast %1 : vector<1x128xf32> to vector<8x128xf32>
      %33 = arith.addf %31, %32 : vector<8x128xf32>
      %34 = arith.mulf %30, %30 : vector<8x128xf32>
      %cst_23 = arith.constant dense<0.000000e+00> : vector<8xf32>
      %35 = vector.multi_reduction <add>, %34, %cst_23 [1] : vector<8x128xf32> to vector<8xf32>
      %36 = vector.shape_cast %35 : vector<8xf32> to vector<8x1xf32>
      %cst_24 = arith.constant 5.000000e-01 : f32
      %37 = vector.broadcast %cst_24 : f32 to vector<8x1xf32>
      %38 = arith.mulf %37, %36 : vector<8x1xf32>
      %cst_25 = arith.constant 0.000000e+00 : f32
      %39 = vector.broadcast %cst_25 : f32 to vector<8x128xf32>
      %40 = arith.maximumf %33, %39 : vector<8x128xf32>
      %41 = vector.broadcast %cst_25 : f32 to vector<8x128xf32>
      %42 = arith.subf %33, %41 : vector<8x128xf32>
      %43 = arith.cmpf one, %42, %42 : vector<8x128xf32>
      %44 = vector.broadcast %cst_25 : f32 to vector<8x128xf32>
      %45 = arith.addf %33, %44 : vector<8x128xf32>
      %46 = math.absf %42 : vector<8x128xf32>
      %cst_26 = arith.constant 0.000000e+00 : f32
      %47 = vector.broadcast %cst_26 : f32 to vector<8x128xf32>
      %48 = arith.subf %47, %46 : vector<8x128xf32>
      %49 = math.exp %48 : vector<8x128xf32>
      %50 = math.log1p %49 : vector<8x128xf32>
      %51 = arith.addf %40, %50 : vector<8x128xf32>
      %52 = arith.select %43, %45, %51 : vector<8x128xi1>, vector<8x128xf32>
      %cst_27 = arith.constant dense<0.000000e+00> : vector<8xf32>
      %53 = vector.multi_reduction <add>, %52, %cst_27 [1] : vector<8x128xf32> to vector<8xf32>
      %54 = vector.shape_cast %53 : vector<8xf32> to vector<8x1xf32>
      %55 = arith.subf %38, %54 : vector<8x1xf32>
      %c0_28 = arith.constant 0 : index
      %c0_29 = arith.constant 0 : index
      %56 = vector.load %arg8[%c0_28, %c0_29] : memref<8x1xf32, #tpu.memory_space<vmem>>, vector<8x1xf32>
      tpu.vector_store %arg8[%c0_28, %c0_29], %55 {strides = array<i32>} : memref<8x1xf32, #tpu.memory_space<vmem>>, vector<8x1xf32>,
    } else {
    }
    %c0_4 = arith.constant 0 : index
    %c0_5 = arith.constant 0 : index
    %5 = vector.load %arg10[%c0_4, %c0_5] : memref<8x128xf32, #tpu.memory_space<vmem>>, vector<8x128xf32>
    %cst = arith.constant dense<0.000000e+00> : vector<8x128xf32>
    %6 = tpu.matmul %5, %0, %cst {dimension_numbers = #tpu.dot_dimension_numbers<[1], [0], [0], [1], [0, 0, 1, 1], [], []>} : vector<8x128xf32>, vector<128x128xf32>, vector<8x128xf32> -> vector<8x128xf32>
    %7 = vector.broadcast %1 : vector<1x128xf32> to vector<8x128xf32>
    %8 = arith.addf %6, %7 : vector<8x128xf32>
    %9 = arith.negf %8 : vector<8x128xf32>
    %10 = math.exp %9 : vector<8x128xf32>
    %cst_6 = arith.constant 1.000000e+00 : f32
    %11 = vector.broadcast %cst_6 : f32 to vector<8x128xf32>
    %12 = arith.addf %11, %10 : vector<8x128xf32>
    %13 = arith.divf %11, %12 : vector<8x128xf32>
    %cst_7 = arith.constant dense<0.000000e+00> : vector<8x128xf32>
    %14 = tpu.matmul %13, %0, %cst_7 {dimension_numbers = #tpu.dot_dimension_numbers<[1], [1], [0], [0], [0, 0, 1, 0], [], []>} : vector<8x128xf32>, vector<128x128xf32>, vector<8x128xf32> -> vector<8x128xf32>
    %15 = arith.subf %5, %14 : vector<8x128xf32>
    %c0_8 = arith.constant 0 : index
    %c0_9 = arith.constant 0 : index
    %c0_10 = arith.constant 0 : index
    %16 = vector.load %arg6[%c0_8, %c0_9, %c0_10] : memref<1x8x128xf32, #tpu.memory_space<vmem>>, vector<1x8x128xf32>
    %17 = vector.shape_cast %16 : vector<1x8x128xf32> to vector<8x128xf32>
    %cst_11 = arith.constant 1.000000e-01 : f32
    %18 = vector.broadcast %cst_11 : f32 to vector<8x128xf32>
    %19 = arith.mulf %18, %15 : vector<8x128xf32>
    %20 = arith.subf %5, %19 : vector<8x128xf32>
    %cst_12 = arith.constant 0.00999999977 : f32
    %21 = vector.broadcast %cst_12 : f32 to vector<8x128xf32>
    %22 = arith.mulf %21, %17 : vector<8x128xf32>
    %23 = arith.addf %20, %22 : vector<8x128xf32>
    %c0_13 = arith.constant 0 : index
    %c0_14 = arith.constant 0 : index
    %24 = vector.load %arg10[%c0_13, %c0_14] : memref<8x128xf32, #tpu.memory_space<vmem>>, vector<8x128xf32>
    tpu.vector_store %arg10[%c0_13, %c0_14], %23 {strides = array<i32>} : memref<8x128xf32, #tpu.memory_space<vmem>>, vector<8x128xf32>,
    %c2_i32 = arith.constant 2 : i32
    %25 = arith.cmpi eq, %arg1, %c2_i32 : i32
    %26 = arith.extui %25 : i1 to i32
    %c0_i32_15 = arith.constant 0 : i32
    %27 = arith.cmpi ne, %26, %c0_i32_15 : i32
    scf.if %27 {
      %cst_16 = arith.constant dense<0.000000e+00> : vector<8x128xf32>
      %28 = tpu.matmul %23, %0, %cst_16 {dimension_numbers = #tpu.dot_dimension_numbers<[1], [0], [0], [1], [0, 0, 1, 1], [], []>} : vector<8x128xf32>, vector<128x128xf32>, vector<8x128xf32> -> vector<8x128xf32>
      %29 = vector.broadcast %1 : vector<1x128xf32> to vector<8x128xf32>
      %30 = arith.addf %28, %29 : vector<8x128xf32>
      %31 = arith.mulf %23, %23 : vector<8x128xf32>
      %cst_17 = arith.constant dense<0.000000e+00> : vector<8xf32>
      %32 = vector.multi_reduction <add>, %31, %cst_17 [1] : vector<8x128xf32> to vector<8xf32>
      %33 = vector.shape_cast %32 : vector<8xf32> to vector<8x1xf32>
      %cst_18 = arith.constant 5.000000e-01 : f32
      %34 = vector.broadcast %cst_18 : f32 to vector<8x1xf32>
      %35 = arith.mulf %34, %33 : vector<8x1xf32>
      %cst_19 = arith.constant 0.000000e+00 : f32
      %36 = vector.broadcast %cst_19 : f32 to vector<8x128xf32>
      %37 = arith.maximumf %30, %36 : vector<8x128xf32>
      %38 = vector.broadcast %cst_19 : f32 to vector<8x128xf32>
      %39 = arith.subf %30, %38 : vector<8x128xf32>
      %40 = arith.cmpf one, %39, %39 : vector<8x128xf32>
      %41 = vector.broadcast %cst_19 : f32 to vector<8x128xf32>
      %42 = arith.addf %30, %41 : vector<8x128xf32>
      %43 = math.absf %39 : vector<8x128xf32>
      %cst_20 = arith.constant 0.000000e+00 : f32
      %44 = vector.broadcast %cst_20 : f32 to vector<8x128xf32>
      %45 = arith.subf %44, %43 : vector<8x128xf32>
      %46 = math.exp %45 : vector<8x128xf32>
      %47 = math.log1p %46 : vector<8x128xf32>
      %48 = arith.addf %37, %47 : vector<8x128xf32>
      %49 = arith.select %40, %42, %48 : vector<8x128xi1>, vector<8x128xf32>
      %cst_21 = arith.constant dense<0.000000e+00> : vector<8xf32>
      %50 = vector.multi_reduction <add>, %49, %cst_21 [1] : vector<8x128xf32> to vector<8xf32>
      %51 = vector.shape_cast %50 : vector<8xf32> to vector<8x1xf32>
      %52 = arith.subf %35, %51 : vector<8x1xf32>
      %c0_22 = arith.constant 0 : index
      %c0_23 = arith.constant 0 : index
      %53 = vector.load %arg9[%c0_22, %c0_23] : memref<8x1xf32, #tpu.memory_space<vmem>>, vector<8x1xf32>
      tpu.vector_store %arg9[%c0_22, %c0_23], %52 {strides = array<i32>} : memref<8x1xf32, #tpu.memory_space<vmem>>, vector<8x1xf32>,
      %c0_24 = arith.constant 0 : index
      %c0_25 = arith.constant 0 : index
      %54 = vector.load %arg7[%c0_24, %c0_25] : memref<8x128xf32, #tpu.memory_space<vmem>>, vector<8x128xf32>
      tpu.vector_store %arg7[%c0_24, %c0_25], %23 {strides = array<i32>} : memref<8x128xf32, #tpu.memory_space<vmem>>, vector<8x128xf32>,
    } else {
    }
    return
  }
  func.func @transform_0(%arg0: i32, %arg1: i32) -> (i32, i32) {
    %c0_i32 = arith.constant 0 : i32
    %c0_i32_0 = arith.constant 0 : i32
    return %arg0, %c0_i32 : i32, i32
  }
  func.func @transform_1(%arg0: i32, %arg1: i32) -> (i32, i32) {
    %c0_i32 = arith.constant 0 : i32
    %c0_i32_0 = arith.constant 0 : i32
    return %arg0, %c0_i32 : i32, i32
  }
  func.func @transform_2(%arg0: i32, %arg1: i32) -> (i32, i32) {
    %c0_i32 = arith.constant 0 : i32
    %c0_i32_0 = arith.constant 0 : i32
    %c0_i32_1 = arith.constant 0 : i32
    return %c0_i32, %c0_i32_0 : i32, i32
  }
  func.func @transform_3(%arg0: i32, %arg1: i32) -> (i32, i32) {
    %c0_i32 = arith.constant 0 : i32
    %c0_i32_0 = arith.constant 0 : i32
    %c0_i32_1 = arith.constant 0 : i32
    return %c0_i32, %c0_i32_0 : i32, i32
  }
  func.func @transform_4(%arg0: i32, %arg1: i32) -> (i32, i32, i32) {
    %c0_i32 = arith.constant 0 : i32
    %c0_i32_0 = arith.constant 0 : i32
    return %arg1, %arg0, %c0_i32 : i32, i32, i32
  }
  func.func @transform_5(%arg0: i32, %arg1: i32) -> (i32, i32) {
    %c0_i32 = arith.constant 0 : i32
    %c0_i32_0 = arith.constant 0 : i32
    return %arg0, %c0_i32 : i32, i32
  }
  func.func @transform_6(%arg0: i32, %arg1: i32) -> (i32, i32) {
    %c0_i32 = arith.constant 0 : i32
    %c0_i32_0 = arith.constant 0 : i32
    return %arg0, %c0_i32 : i32, i32
  }
  func.func @transform_7(%arg0: i32, %arg1: i32) -> (i32, i32) {
    %c0_i32 = arith.constant 0 : i32
    %c0_i32_0 = arith.constant 0 : i32
    return %arg0, %c0_i32 : i32, i32
  }
}

</mosaic_0001>

<bundles_post_ra>
// kernel: cd_loss_pallas.1
= control target key start
LH: loop header
LB: loop body
LE: loop exit
PB: predicated region body
PF: predicated region fallthrough
CT: control target
= control target key end

     0   :  { %13 = vsyncpa [#allocation4], 0  ;;  %s847_s24 = smov 0   ;;  %s849_s25 = smov 0   ;;  %s1055_s0 = inlined_call_operand.vmem [shape: f32[8,128], index: 0, kind: input, shape index: {}]   ;;  %s1056_s1 = inlined_call_operand.vmem [shape: f32[8,128], index: 1, kind: input, shape index: {}]   ;;  %s1057_s2 = inlined_call_operand.vmem [shape: f32[128,128], index: 2, kind: input, shape index: {}]   ;;  %s1058_s3 = inlined_call_operand.vmem [shape: f32[1,128], index: 3, kind: input, shape index: {}]   ;;  %s1059_s4 = inlined_call_operand.vmem [shape: f32[3,8,128], index: 4, kind: input, shape index: {}]   ;;  %s1060_s5 = inlined_call_operand.hbm [shape: f32[8,128], index: 5, kind: output, shape index: {0}]   ;;  %s1061_s6 = inlined_call_operand.vmem [shape: f32[8,1], index: 6, kind: output, shape index: {1}]   ;;  %s1062_s7 = inlined_call_operand.vmem [shape: f32[8,1], index: 7, kind: output, shape index: {2}]  }
   0x1   :  { %s851_s26 = smov 0  }
   0x2 LB: > { %s691_s27 = sadd.s32 4294967295, %s804_s26   ;;  %s28_s28 = sadd.s32 1, %s800_s25  ;;  %s804_s26 = sphi %s851_s26, %s19_s26   ;;  %s800_s25 = sphi %s849_s25, %s1064_s25   ;;  %s796_s24 = sphi %s847_s24, %s1063_s24  }
   0x3   : > { %p29_p0 = scmp.ge.s32.totalorder %s28_s28, 3  ;;  %p696_p1 = scmp.ge.s32.totalorder %s804_s26, 1 }
   0x4   : > { %p277_p2 = scmp.lt.s32.totalorder %s804_s26, 4 }
   0x5   : > { %s1066_s28 = smov (%p29_p0, %s28_s28), 0 }
   0x6   : > { %p278_p3 = pnand %p696_p1, %p277_p2 }
   0x7   : > { %p330_p4 = scmp.lt.s32.totalorder (!%p278_p3), %s796_s24, 2  ;;  %p698_p5 = scmp.ne.s32.totalorder (!%p278_p3), %s796_s24, 0 }
   0x8   : > { %281 = sbr.rel (%p278_p3) target bundleno = 959 (0x3bf), region = 40 }
   0xd   : > { %v872_v0 = vld [vmem:[%s1057_s2] sm:$0xff]  ;;  %v877_v1 = vld [vmem:[%s1057_s2 + $0x8] sm:$0xff]  ;;  %v882_v2 = vld [vmem:[%s1057_s2 + $0x10] sm:$0xff]  ;;  %s331_s18 = scalar_select %p330_p4, %s796_s24, 2 }
   0xe   : > { %v887_v3 = vld [vmem:[%s1057_s2 + $0x18] sm:$0xff]  ;;  %v892_v4 = vld [vmem:[%s1057_s2 + $0x20] sm:$0xff]  ;;  %v897_v5 = vld [vmem:[%s1057_s2 + $0x28] sm:$0xff]  ;;  %365 = sbr.rel (%p698_p5) target bundleno = 325 (0x145), region = 44 }
   0xf   : > { %v903_v6 = vld [vmem:[%s1057_s2 + $0x30] sm:$0xff]  ;;  %v908_v7 = vld [vmem:[%s1057_s2 + $0x38] sm:$0xff]  ;;  %v913_v8 = vld [vmem:[%s1057_s2 + $0x40] sm:$0xff]  ;;  %s697_s13 = sshll.u32 %s331_s18, 3 }
  0x10   : > { %v918_v9 = vld [vmem:[%s1057_s2 + $0x48] sm:$0xff]  ;;  %v923_v10 = vld [vmem:[%s1057_s2 + $0x50] sm:$0xff]  ;;  %v928_v11 = vld [vmem:[%s1057_s2 + $0x58] sm:$0xff]  ;;  %s948_s23 = scalar_lea.vmem %s1059_s4, %s697_s13 }
  0x11   : > { %v933_v12 = vld [vmem:[%s1057_s2 + $0x60] sm:$0xff]  ;;  %v938_v13 = vld [vmem:[%s1057_s2 + $0x68] sm:$0xff]  ;;  %v943_v14 = vld [vmem:[%s1057_s2 + $0x70] sm:$0xff] }
  0x12   : > { %v953_v15 = vld [vmem:[%s1057_s2 + $0x78] sm:$0xff]  ;;  %v958_v16 = vld [vmem:[%s1058_s3] sm:$0x1] }
  0x13   : > { %v366_v17 = vld [vmem:[%s1056_s1] sm:$0xff]  ;;  %372 = vmatpush.msra.mxu0 %v953_v15  ;;  %v370_v20 = vperm.slane %v958_v16, 0  ;;  %vm417_vm2 = vcmask 7168  }
  0x14   : > { %367 = vst [vmem:[#allocation2] sm:$0xff] %v366_v17  ;;  %v368_v18 = vld [vmem:[%s1055_s0] sm:$0xff] }
  0x15   : > { %373 = vmatpush.msra.mxu0 %v943_v14  ;;  %v392_v19 = vmul.f32 %v368_v18, %v368_v18 }
  0x17   : > { %374 = vmatpush.msra.mxu0 %v938_v13  ;;  %393 = vadd.xlane.f32.xlu0 %v392_v19 }
  0x19   : > { %375 = vmatpush.msra.mxu0 %v933_v12 }
  0x1b   : > { %376 = vmatpush.msra.mxu0 %v928_v11 }
  0x1d   : > { %377 = vmatpush.msra.mxu0 %v923_v10 }
  0x1f   : > { %378 = vmatpush.msra.mxu0 %v918_v9 }
  0x21   : > { %379 = vmatpush.msra.mxu0 %v913_v8 }
  0x23   : > { %380 = vmatpush.msra.mxu0 %v908_v7 }
  0x25   : > { %381 = vmatpush.msra.mxu0 %v903_v6 }
  0x27   : > { %382 = vmatpush.msra.mxu0 %v897_v5 }
  0x29   : > { %383 = vmatpush.msra.mxu0 %v892_v4 }
  0x2b   : > { %384 = vmatpush.msra.mxu0 %v887_v3 }
  0x2d   : > { %385 = vmatpush.msra.mxu0 %v882_v2 }
  0x2f   : > { %386 = vmatpush.msra.mxu0 %v877_v1 }
  0x31   : > { %387 = vmatpush.msra.mxu0 %v872_v0 }
  0x32   : > { %388 = vmatmul.f32.vlgmr.msra.gmra.mxu0 %v368_v18 }
  0x8a   : > { %v394_v38 = vpop.xlane.xlu0 %393 }
  0x8b   : > { %v395_v39 = vmul.f32 0.5, %v394_v38 }
  0xaf   : > { %v389_v21 = vpop.f32.mrf.mxu0 }
  0xb0   : > { %v390_v22 = vadd.f32 %v389_v21, %v370_v20 }
  0xb2   : > { %v399_v23 = vand.u32 2147483647, %v390_v22  ;;  %v396_v34 = vmax.f32 %v390_v22, 0.0  ;;  %vm397_vm1 = vcmp.ne.f32.partialorder %v390_v22, %v390_v22 }
  0xb4   : > { %v400_v24 = vsub.f32 0.0, %v399_v23 }
  0xb6   : > { %v401_v25 = vmul.f32 1.442695, %v400_v24 }
  0xb8   : > { %738 = vpow2.f32 %v401_v25 }
  0xbe   : > { %v739_v26 = vpop.eup %738 }
  0xbf   : > { %v403_v27 = vadd.f32 1.0, %v739_v26  ;;  %v406_v28 = vmul.f32 -0.5, %v739_v26  ;;  %v409_v30 = vand.u32 2147483647, %v739_v26 }
  0xc1   : > { %740 = vlog2.f32 %v403_v27  ;;  %v407_v29 = vadd.f32 1.0, %v406_v28  ;;  %vm410_vm0 = vcmp.lt.f32.partialorder %v409_v30, 0.0004427343 }
  0xc3   : > { %v408_v33 = vmul.f32 %v739_v26, %v407_v29 }
  0xc7   : > { %v741_v31 = vpop.eup %740 }
  0xc8   : > { %v405_v32 = vmul.f32 0.6931472, %v741_v31 }
  0xca   : > { %v411_v35 = vsel %vm410_vm0, %v408_v33, %v405_v32 }
  0xcb   : > { %v412_v36 = vadd.f32 %v411_v35, %v396_v34 }
  0xcd   : > { %v413_v37 = vsel %vm397_vm1, %v390_v22, %v412_v36 }
  0xce   : > { %414 = vadd.xlane.f32.xlu0 %v413_v37 }
 0x141   : > { %v415_v40 = vpop.xlane.xlu0 %414 }
 0x142   : > { %v416_v41 = vsub.f32 %v395_v39, %v415_v40 }
 0x144   : > { %418 = vst.msk [vmem:[%s1061_s6] sm:$0xff] %vm417_vm2, %v416_v41 }
 0x145 PF: > { %423 = vmatpush.msra.mxu0 %v953_v15  ;;  %462 = vmatpush.xpose.msra.mxu1 %v953_v15  ;;  %v419_v42 = vld [vmem:[#allocation2] sm:$0xff]  ;;  %v421_v43 = vperm.slane %v958_v16, 0  ;;  %p700_p6 = scmp.ne.s32.totalorder %s796_s24, 2 }
 0x146   : > { %v483_v60 = vld [vmem:[%s948_s23] sm:$0xff] }
 0x147   : > { %424 = vmatpush.msra.mxu0 %v943_v14  ;;  %v486_v63 = vmul.f32 0.01, %v483_v60 }
 0x149   : > { %425 = vmatpush.msra.mxu0 %v938_v13  ;;  %463 = vmatpush.xpose.msra.mxu1 %v943_v14 }
 0x14b   : > { %426 = vmatpush.msra.mxu0 %v933_v12 }
 0x14d   : > { %427 = vmatpush.msra.mxu0 %v928_v11  ;;  %464 = vmatpush.xpose.msra.mxu1 %v938_v13 }
 0x14f   : > { %428 = vmatpush.msra.mxu0 %v923_v10 }
 0x151   : > { %429 = vmatpush.msra.mxu0 %v918_v9  ;;  %465 = vmatpush.xpose.msra.mxu1 %v933_v12 }
 0x153   : > { %430 = vmatpush.msra.mxu0 %v913_v8 }
 0x155   : > { %431 = vmatpush.msra.mxu0 %v908_v7  ;;  %466 = vmatpush.xpose.msra.mxu1 %v928_v11 }
 0x157   : > { %432 = vmatpush.msra.mxu0 %v903_v6 }
 0x159   : > { %433 = vmatpush.msra.mxu0 %v897_v5  ;;  %467 = vmatpush.xpose.msra.mxu1 %v923_v10 }
 0x15b   : > { %434 = vmatpush.msra.mxu0 %v892_v4 }
 0x15d   : > { %435 = vmatpush.msra.mxu0 %v887_v3  ;;  %468 = vmatpush.xpose.msra.mxu1 %v918_v9 }
 0x15f   : > { %436 = vmatpush.msra.mxu0 %v882_v2 }
 0x161   : > { %437 = vmatpush.msra.mxu0 %v877_v1  ;;  %469 = vmatpush.xpose.msra.mxu1 %v913_v8 }
 0x163   : > { %438 = vmatpush.msra.mxu0 %v872_v0 }
 0x164   : > { %439 = vmatmul.f32.vlgmr.msra.gmra.mxu0 %v419_v42 }
 0x165   : > { %470 = vmatpush.xpose.msra.mxu1 %v908_v7 }
 0x169   : > { %471 = vmatpush.xpose.msra.mxu1 %v903_v6 }
 0x16d   : > { %472 = vmatpush.xpose.msra.mxu1 %v897_v5 }
 0x171   : > { %473 = vmatpush.xpose.msra.mxu1 %v892_v4 }
 0x175   : > { %474 = vmatpush.xpose.msra.mxu1 %v887_v3 }
 0x179   : > { %475 = vmatpush.xpose.msra.mxu1 %v882_v2 }
 0x17d   : > { %476 = vmatpush.xpose.msra.mxu1 %v877_v1 }
 0x181   : > { %477 = vmatpush.xpose.msra.mxu1 %v872_v0 }
 0x1e1   : > { %v440_v44 = vpop.f32.mrf.mxu0 }
 0x1e2   : > { %v441_v45 = vadd.f32 %v440_v44, %v421_v43 }
 0x1e4   : > { %v699_v46 = vmul.f32 -1.442695, %v441_v45 }
 0x1e6   : > { %742 = vpow2.f32 %v699_v46 }
 0x1ec   : > { %v743_v47 = vpop.eup %742 }
 0x1ed   : > { %v446_v48 = vadd.f32 1.0, %v743_v47 }
 0x1ef   : > { %744 = vrcp.f32 %v446_v48  ;;  %v458_v52 = vand.u32 2147483648, %v446_v48  ;;  %v456_v54 = vand.u32 2147483647, %v446_v48  ;;  %vm452_vm4 = vweird.f32 %v446_v48 }
 0x1f1   : > { %v459_v56 = vor.u32 1.1754944e-38, %v458_v52  ;;  %vm457_vm6 = vcmp.eq.f32.partialorder %v456_v54, 8.507059e+37 }
 0x1f5   : > { %v745_v49 = vpop.eup %744 }
 0x1f6   : > { %v448_v50 = vmul.f32 %v745_v49, %v446_v48  ;;  %vm453_vm3 = vweird.f32 %v745_v49 }
 0x1f7   : > { %vm454_vm5 = vmor %vm452_vm4, %vm453_vm3 }
 0x1f8   : > { %v449_v51 = vsub.f32 1.0, %v448_v50 }
 0x1fa   : > { %v450_v53 = vmul.f32 %v745_v49, %v449_v51 }
 0x1fc   : > { %v451_v55 = vadd.f32 %v745_v49, %v450_v53 }
 0x1fe   : > { %v455_v57 = vsel %vm454_vm5, %v745_v49, %v451_v55 }
 0x1ff   : > { %v460_v58 = vsel %vm457_vm6, %v459_v56, %v455_v57 }
 0x200   : > { %478 = vmatmul.f32.vlgmr.msra.gmra.mxu1 %v460_v58 }
 0x27d   : > { %v479_v59 = vpop.f32.mrf.mxu1 }
 0x27e   : > { %v482_v61 = vsub.f32 %v419_v42, %v479_v59 }
 0x280   : > { %v484_v62 = vmul.f32 0.1, %v482_v61 }
 0x282   : > { %v485_v16 = vsub.f32 %v419_v42, %v484_v62  ;;  %492 = sbr.rel (%p700_p6) target bundleno = 953 (0x3b9), region = 48 }
 0x284   : > { %v487_v17 = vadd.f32 %v486_v63, %v485_v16 }
 0x286   : > { %488 = vst [vmem:[#allocation2] sm:$0xff] %v487_v17 }
 0x287   : > { %493 = vmatpush.msra.mxu0 %v953_v15  ;;  %540 = vst [vmem:[#allocation3] sm:$0xff] %v487_v17  ;;  %vm538_vm9 = vcmask 7168  }
 0x289   : > { %494 = vmatpush.msra.mxu0 %v943_v14 }
 0x28b   : > { %495 = vmatpush.msra.mxu0 %v938_v13 }
 0x28d   : > { %496 = vmatpush.msra.mxu0 %v933_v12 }
 0x28f   : > { %497 = vmatpush.msra.mxu0 %v928_v11 }
 0x291   : > { %498 = vmatpush.msra.mxu0 %v923_v10 }
 0x293   : > { %499 = vmatpush.msra.mxu0 %v918_v9  ;;  %v513_v9 = vmul.f32 %v487_v17, %v487_v17 }
 0x295   : > { %500 = vmatpush.msra.mxu0 %v913_v8  ;;  %514 = vadd.xlane.f32.xlu0 %v513_v9 }
 0x297   : > { %501 = vmatpush.msra.mxu0 %v908_v7 }
 0x299   : > { %502 = vmatpush.msra.mxu0 %v903_v6 }
 0x29b   : > { %503 = vmatpush.msra.mxu0 %v897_v5 }
 0x29d   : > { %504 = vmatpush.msra.mxu0 %v892_v4 }
 0x29f   : > { %505 = vmatpush.msra.mxu0 %v887_v3 }
 0x2a1   : > { %506 = vmatpush.msra.mxu0 %v882_v2 }
 0x2a3   : > { %507 = vmatpush.msra.mxu0 %v877_v1 }
 0x2a5   : > { %508 = vmatpush.msra.mxu0 %v872_v0 }
 0x2a6   : > { %509 = vmatmul.f32.vlgmr.msra.gmra.mxu0 %v487_v17 }
 0x308   : > { %v515_v20 = vpop.xlane.xlu0 %514 }
 0x309   : > { %v516_v21 = vmul.f32 0.5, %v515_v20 }
 0x323   : > { %v510_v8 = vpop.f32.mrf.mxu0 }
 0x324   : > { %v511_v10 = vadd.f32 %v510_v8, %v421_v43 }
 0x326   : > { %v520_v7 = vand.u32 2147483647, %v511_v10  ;;  %v517_v15 = vmax.f32 %v511_v10, 0.0  ;;  %vm518_vm8 = vcmp.ne.f32.partialorder %v511_v10, %v511_v10 }
 0x328   : > { %v521_v11 = vsub.f32 0.0, %v520_v7 }
 0x32a   : > { %v522_v6 = vmul.f32 1.442695, %v521_v11 }
 0x32c   : > { %746 = vpow2.f32 %v522_v6 }
 0x332   : > { %v747_v5 = vpop.eup %746 }
 0x333   : > { %v524_v12 = vadd.f32 1.0, %v747_v5  ;;  %v527_v4 = vmul.f32 -0.5, %v747_v5  ;;  %v530_v13 = vand.u32 2147483647, %v747_v5 }
 0x335   : > { %748 = vlog2.f32 %v524_v12  ;;  %v528_v3 = vadd.f32 1.0, %v527_v4  ;;  %vm531_vm7 = vcmp.lt.f32.partialorder %v530_v13, 0.0004427343 }
 0x337   : > { %v529_v1 = vmul.f32 %v747_v5, %v528_v3 }
 0x33b   : > { %v749_v2 = vpop.eup %748 }
 0x33c   : > { %v526_v14 = vmul.f32 0.6931472, %v749_v2 }
 0x33e   : > { %v532_v0 = vsel %vm531_vm7, %v529_v1, %v526_v14 }
 0x33f   : > { %v533_v18 = vadd.f32 %v532_v0, %v517_v15 }
 0x341   : > { %v534_v19 = vsel %vm518_vm8, %v511_v10, %v533_v18 }
 0x342   : > { %535 = vadd.xlane.f32.xlu0 %v534_v19 }
 0x3b5   : > { %v536_v22 = vpop.xlane.xlu0 %535 }
 0x3b6   : > { %v537_v23 = vsub.f32 %v516_v21, %v536_v22 }
 0x3b8   : > { %539 = vst.msk [vmem:[%s1062_s7] sm:$0xff] %vm538_vm9, %v537_v23 }
 0x3b9 PF: > { %p711_p7 = scmp.eq.s32.totalorder %s691_s27, 2  ;;  %s559_s19 = sshll.u32 %s1060_s5, 4  ;;  %s560_s19 = int_to_ptr.hbm [resolvable:$true] %s559_s19 }
 0x3ba   : > { %s806_s20 = smov [#allocation3]  }
 0x3bb   : > { %s557_s21 = sshll.u32 %s806_s20, 4  ;;  %s558_s21 = int_to_ptr.vmem [resolvable:$true] %s557_s21 }
 0x3bc   : > { %708 = dma.vmem_to_hbm [thread:$0]  (%p711_p7), %s558_s21, 128, %s560_s19, [#allocation4]  }
 0x3bd   : > { %791 = dma.done.wait (%p711_p7), [#allocation4], 128  }
 0x3be   : > { %793 = vsyncadd (%p711_p7), [#allocation4], 4294967168 }
 0x3bf PF: > { %s19_s26 = sadd.s32 1, %s804_s26   ;;  %s1063_s24 = smov %s800_s25 }
 0x3c0   : > { %p16_p8 = scmp.ge.s32.totalorder %s19_s26, 5   ;;  %s1064_s25 = smov %s1066_s28 }
 0x3c2   :  { %18 = sbr.rel (!%p16_p8) target bundleno = 2 (0x2), region = 106 }
 0x3c7   :  { %593 = vsyncpa [#allocation4], 1 }
 0x3c8   :  { %595 = vsyncpa [#allocation4 + $0x1], 1 }

</bundles_post_ra>
